<compile_context>
chip_gen: v5e
topology: v5e:2x2
jax: 0.10.0
libtpu: 0.0.40
codegen_flags: <defaults>
</compile_context>

<pallas_src>
import jax
import jax.numpy as jnp
from jax.experimental import pallas as pl
from jax.experimental.pallas import tpu as pltpu


def embed_body_kernel(patches_ref, w_ref, pos_body_ref, out_ref):
    """Project k images of flattened patches and add the fused (bias+pos) rows.

    patches_ref:  (k, Np, P)   k whole images of flattened patches
    w_ref:        (P,  Dp)     projection weight (resident across grid steps)
    pos_body_ref: (Np, Dp)     pos_embed[1:] + bias, pre-fused, f32, resident
    out_ref:      (k, Np, Dp)  body rows only (cls row handled in the wrapper)
    """
    k, Np, P = patches_ref.shape
    Dp = w_ref.shape[1]

    # Fold the k images of this grid step into the matmul M dimension.
    xk = patches_ref[...].reshape(k * Np, P)                           # (k*Np, P)
    y = jnp.dot(xk, w_ref[...], preferred_element_type=jnp.float32)   # f32 acc

    body = y.reshape(k, Np, Dp) + pos_body_ref[...][None, :, :]       # bias+pos
    out_ref[...] = body.astype(out_ref.dtype)                         # aligned vst


def _round_up(x, m):
    return (x + m - 1) // m * m


def _choose_k(B, n_rows, target_rows):
    """Images per grid step: largest k with k*n_rows <= target_rows (>= 1).

    The grid is a serial loop on a single TensorCore, so we prefer few, large
    steps; B is padded up to a multiple of k by the caller.
    """
    if n_rows >= target_rows:
        return 1
    return max(1, min(B, target_rows // n_rows))


def embedding_layer_forward(x, w, b, cls_token, pos_embed, patch_size,
                            *, compute_dtype=jnp.bfloat16, out_dtype=None,
                            target_rows=512):
    """x: (B, C, H, W).  Returns (B, num_patches + 1, embed_dim) in out_dtype."""
    B, C, H, W = x.shape
    p = patch_size
    if H % p != 0 or W % p != 0:
        raise ValueError(
            f"Input image size ({H}x{W}) must be divisible by the patch size ({p})."
        )
    nph, npw = H // p, W // p
    N = nph * npw
    P = C * p * p
    D = w.shape[1]

    out_dtype = x.dtype if out_dtype is None else out_dtype
    cdt = x.dtype if compute_dtype is None else compute_dtype

    # --- glue: patch extraction (matches torch unfold/permute/view order).
    # Cast to compute_dtype FIRST so the materialized (B, N, P) tensor is
    # half the HBM bytes in the bf16 default.
    xc = x.astype(cdt)
    patches = xc.reshape(B, C, nph, p, npw, p)
    patches = jnp.transpose(patches, (0, 2, 4, 1, 3, 5)).reshape(B, N, P)

    # --- pre-fuse constants: bias into body pos rows, cls into pos row 0 ---
    pos2 = pos_embed.reshape(N + 1, D).astype(jnp.float32)
    pos_body = pos2[1:, :] + b.reshape(1, D).astype(jnp.float32)           # (N, D)
    row0 = cls_token.reshape(1, D).astype(jnp.float32) + pos2[0:1, :]      # (1, D)

    # --- hardware-native padding: lanes (D) -> 128-multiple, sublanes (N) -> 8 ---
    Dp = _round_up(D, 128)
    Np = _round_up(N, 8)

    w_in = w.astype(cdt)
    if Dp != D:
        w_in = jnp.pad(w_in, ((0, 0), (0, Dp - D)))
        pos_body = jnp.pad(pos_body, ((0, 0), (0, Dp - D)))
    if Np != N:
        patches = jnp.pad(patches, ((0, 0), (0, Np - N), (0, 0)))
        pos_body = jnp.pad(pos_body, ((0, Np - N), (0, 0)))

    # --- tiling: fold k images into the matmul M dim, pad B to a k-multiple ---
    k = _choose_k(B, Np, target_rows)
    Bp = _round_up(B, k)
    if Bp != B:
        patches = jnp.pad(patches, ((0, Bp - B), (0, 0), (0, 0)))
    grid = (Bp // k,)

    in_itemsize = jnp.dtype(cdt).itemsize
    out_itemsize = jnp.dtype(out_dtype).itemsize

    flops = 2 * Bp * Np * P * Dp
    bytes_accessed = (Bp * Np * P * in_itemsize        # patches
                      + P * Dp * in_itemsize           # weight
                      + Np * Dp * 4                    # fused pos+bias
                      + Bp * Np * Dp * out_itemsize)   # output body

    # VMEM budget: double-buffered patch + out blocks, resident W / pos,
    # plus the f32 intermediate.  Cap below v7x's 64 MiB physical VMEM.
    vmem_est = (2 * k * Np * P * in_itemsize
                + 2 * k * Np * Dp * out_itemsize
                + 2 * P * Dp * in_itemsize
                + 2 * Np * Dp * 4
                + k * Np * Dp * 4)
    vmem_limit = int(min(40 * 1024 * 1024,
                         max(2 * vmem_est, 16 * 1024 * 1024)))

    body = pl.pallas_call(
        embed_body_kernel,
        out_shape=jax.ShapeDtypeStruct((Bp, Np, Dp), out_dtype),
        grid_spec=pltpu.PrefetchScalarGridSpec(
            num_scalar_prefetch=0,
            grid=grid,
            in_specs=[
                # k images of flattened patches per step (matmul M tile).
                pl.BlockSpec((k, Np, P), lambda i: (i, 0, 0)),
                # Constant block index -> stays resident in VMEM across steps.
                pl.BlockSpec((P, Dp), lambda i: (0, 0)),
                pl.BlockSpec((Np, Dp), lambda i: (0, 0)),
            ],
            out_specs=pl.BlockSpec((k, Np, Dp), lambda i: (i, 0, 0)),
        ),
        compiler_params=pltpu.CompilerParams(
            dimension_semantics=("parallel",),
            vmem_limit_bytes=vmem_limit,
        ),
        cost_estimate=pl.CostEstimate(
            flops=flops, transcendentals=0, bytes_accessed=bytes_accessed),
    )(patches, w_in, pos_body)

    body = body[:B, :N, :D]

    # cls + pos[0] is a constant broadcast -- no kernel work needed.
    head = jnp.broadcast_to(row0.astype(out_dtype)[None, :, :], (B, 1, D))
    return jnp.concatenate([head, body], axis=1)


def reference_forward(x, w, b, cls_token, pos_embed, patch_size):
    B, C, H, W = x.shape
    p = patch_size
    nph, npw = H // p, W // p
    patches = x.reshape(B, C, nph, p, npw, p)
    patches = jnp.transpose(patches, (0, 2, 4, 1, 3, 5)).reshape(B, nph * npw, -1)
    y = patches @ w + b
    cls = jnp.broadcast_to(cls_token, (B, 1, w.shape[1]))
    y = jnp.concatenate([cls, y], axis=1)
    return y + pos_embed


if __name__ == "__main__":
    # Module hyperparameters (small, consistent with the forward pass).
    img_size = 16
    patch_size = 4
    in_chans = 4
    embed_dim = 32
    B = 2

    num_patches = (img_size // patch_size) ** 2          # 16
    patch_dim = patch_size * patch_size * in_chans       # 64

    key = jax.random.PRNGKey(0)
    kx, kw, kb, kc, kp = jax.random.split(key, 5)

    # nn.Linear default init: U(-1/sqrt(patch_dim), 1/sqrt(patch_dim))
    bound = 1.0 / (patch_dim ** 0.5)
    w_linear = jax.random.uniform(kw, (embed_dim, patch_dim),
                                  minval=-bound, maxval=bound,
                                  dtype=jnp.float32)
    w = w_linear.T                                        # (patch_dim, embed_dim)
    b = jax.random.uniform(kb, (embed_dim,), minval=-bound, maxval=bound,
                           dtype=jnp.float32)
    # trunc_normal_(std=0.02)
    cls_token = 0.02 * jax.random.truncated_normal(
        kc, -2.0, 2.0, (1, 1, embed_dim), dtype=jnp.float32)
    pos_embed = 0.02 * jax.random.truncated_normal(
        kp, -2.0, 2.0, (1, num_patches + 1, embed_dim), dtype=jnp.float32)

    x = jax.random.normal(kx, (B, in_chans, img_size, img_size), dtype=jnp.float32)

    ref = reference_forward(x, w, b, cls_token, pos_embed, patch_size)

    # Exact-ish f32 path (matches the PyTorch module numerics).
    out_f32 = embedding_layer_forward(x, w, b, cls_token, pos_embed, patch_size,
                                      compute_dtype=None)
    out_f32 = jax.block_until_ready(out_f32)
    assert out_f32.shape == (B, num_patches + 1, embed_dim), out_f32.shape
    assert jnp.allclose(out_f32, ref, atol=1e-5, rtol=1e-5), "f32 mismatch vs reference"

    # Default path: bf16 operands, f32 accumulation -> bf16-rounding tolerance.
    out_bf16 = embedding_layer_forward(x, w, b, cls_token, pos_embed, patch_size)
    out_bf16 = jax.block_until_ready(out_bf16)
    assert out_bf16.shape == (B, num_patches + 1, embed_dim), out_bf16.shape
    assert jnp.allclose(out_bf16, ref, atol=2e-2, rtol=2e-2), "bf16 mismatch vs reference"

    print("KERNEL_OK")
</pallas_src>

<mosaic_0001>
module attributes {stable_mosaic.version = 11 : i64} {
  func.func @embed_body_kernel(%arg0: i32, %arg1: memref<2x16x64xf32, #tpu.memory_space<vmem>>, %arg2: memref<64x128xf32, #tpu.memory_space<vmem>>, %arg3: memref<16x128xf32, #tpu.memory_space<vmem>>, %arg4: memref<2x16x128xf32, #tpu.memory_space<vmem>>) attributes {dimension_semantics = [#tpu.dimension_semantics<parallel>], iteration_bounds = array<i64: 1>, scalar_prefetch = 0 : i64, scratch_operands = 0 : i64, tpu.core_type = #tpu.core_type<tc>, window_params = [{transform_indices = @transform_0, window_bounds = array<i64: 2, 16, 64>}, {pipeline_mode = #tpu.pipeline_mode<synchronous>, transform_indices = @transform_1, window_bounds = array<i64: 64, 128>}, {pipeline_mode = #tpu.pipeline_mode<synchronous>, transform_indices = @transform_2, window_bounds = array<i64: 16, 128>}, {transform_indices = @transform_3, window_bounds = array<i64: 2, 16, 128>}]} {
    %c0 = arith.constant 0 : index
    %c0_0 = arith.constant 0 : index
    %c0_1 = arith.constant 0 : index
    %0 = vector.load %arg1[%c0, %c0_0, %c0_1] : memref<2x16x64xf32, #tpu.memory_space<vmem>>, vector<2x16x64xf32>
    %1 = vector.shape_cast %0 : vector<2x16x64xf32> to vector<32x64xf32>
    %c0_2 = arith.constant 0 : index
    %c0_3 = arith.constant 0 : index
    %2 = vector.load %arg2[%c0_2, %c0_3] : memref<64x128xf32, #tpu.memory_space<vmem>>, vector<64x128xf32>
    %cst = arith.constant dense<0.000000e+00> : vector<32x128xf32>
    %3 = tpu.matmul %1, %2, %cst {dimension_numbers = #tpu.dot_dimension_numbers<[1], [0], [0], [1], [0, 0, 1, 1], [], []>} : vector<32x64xf32>, vector<64x128xf32>, vector<32x128xf32> -> vector<32x128xf32>
    %4 = vector.shape_cast %3 : vector<32x128xf32> to vector<2x16x128xf32>
    %c0_4 = arith.constant 0 : index
    %c0_5 = arith.constant 0 : index
    %5 = vector.load %arg3[%c0_4, %c0_5] : memref<16x128xf32, #tpu.memory_space<vmem>>, vector<16x128xf32>
    %6 = vector.shape_cast %5 : vector<16x128xf32> to vector<1x16x128xf32>
    %7 = vector.broadcast %6 : vector<1x16x128xf32> to vector<2x16x128xf32>
    %8 = arith.addf %4, %7 : vector<2x16x128xf32>
    %c0_6 = arith.constant 0 : index
    %c0_7 = arith.constant 0 : index
    %c0_8 = arith.constant 0 : index
    %9 = vector.load %arg4[%c0_6, %c0_7, %c0_8] : memref<2x16x128xf32, #tpu.memory_space<vmem>>, vector<2x16x128xf32>
    tpu.vector_store %arg4[%c0_6, %c0_7, %c0_8], %8 {strides = array<i32>} : memref<2x16x128xf32, #tpu.memory_space<vmem>>, vector<2x16x128xf32>,
    return
  }
  func.func @transform_0(%arg0: i32) -> (i32, i32, i32) {
    %c0_i32 = arith.constant 0 : i32
    %c0_i32_0 = arith.constant 0 : i32
    %c0_i32_1 = arith.constant 0 : i32
    return %arg0, %c0_i32, %c0_i32_0 : i32, i32, i32
  }
  func.func @transform_1(%arg0: i32) -> (i32, i32) {
    %c0_i32 = arith.constant 0 : i32
    %c0_i32_0 = arith.constant 0 : i32
    %c0_i32_1 = arith.constant 0 : i32
    return %c0_i32, %c0_i32_0 : i32, i32
  }
  func.func @transform_2(%arg0: i32) -> (i32, i32) {
    %c0_i32 = arith.constant 0 : i32
    %c0_i32_0 = arith.constant 0 : i32
    %c0_i32_1 = arith.constant 0 : i32
    return %c0_i32, %c0_i32_0 : i32, i32
  }
  func.func @transform_3(%arg0: i32) -> (i32, i32, i32) {
    %c0_i32 = arith.constant 0 : i32
    %c0_i32_0 = arith.constant 0 : i32
    %c0_i32_1 = arith.constant 0 : i32
    return %arg0, %c0_i32, %c0_i32_0 : i32, i32, i32
  }
}

</mosaic_0001>

<bundles_post_ra>
// kernel: tpu_custom_call.1
= control target key start
LH: loop header
LB: loop body
LE: loop exit
PB: predicated region body
PF: predicated region fallthrough
CT: control target
= control target key end

     0   :  { %8 = vsyncpa [#allocation3], 0  ;;  %s332_s0 = inlined_call_operand.hbm [shape: f32[2,16,64], index: 0, kind: input, shape index: {}]   ;;  %s333_s1 = inlined_call_operand.hbm [shape: f32[64,128], index: 1, kind: input, shape index: {}]   ;;  %s334_s2 = inlined_call_operand.hbm [shape: f32[16,128], index: 2, kind: input, shape index: {}]   ;;  %s335_s3 = inlined_call_operand.hbm [shape: f32[2,16,128], index: 3, kind: output, shape index: {}]  }
   0x1   :  { %9 = vsyncpa [#allocation6], 0 }
   0x2   :  { %10 = vsyncpa [#allocation4], 0  ;;  %s28_s14 = sshll.u32 %s333_s1, 4  ;;  %s282_s15 = smov [#allocation5]   ;;  %s29_s14 = int_to_ptr.hbm [resolvable:$true] %s28_s14 }
   0x3   :  { %s30_s16 = sshll.u32 %s282_s15, 4  ;;  %s15_s19 = sshll.u32 %s332_s0, 4  ;;  %s31_s16 = int_to_ptr.vmem [resolvable:$true] %s30_s16  ;;  %s16_s19 = int_to_ptr.hbm [resolvable:$true] %s15_s19 }
   0x4   :  { %s283_s20 = smov 128   ;;  %s284_s21 = smov 8  }
   0x5   :  { %36 = dma.hbm_to_vmem [thread:$0]  %s29_s14, 1024, %s31_s16, [#allocation6], %s283_s20, %s283_s20, %s284_s21  }
   0x6   :  { %s285_s22 = smov [#allocation2]   ;;  %s41_s1 = sshll.u32 %s334_s2, 4  ;;  %s42_s1 = int_to_ptr.hbm [resolvable:$true] %s41_s1 }
   0x7   :  { %s17_s23 = sshll.u32 %s285_s22, 4  ;;  %s286_s0 = smov [#allocation7]   ;;  %s18_s23 = int_to_ptr.vmem [resolvable:$true] %s17_s23 }
   0x8   :  { %23 = dma.hbm_to_vmem [thread:$0]  %s16_s19, 512, %s18_s23, [#allocation3], %s283_s20, %s283_s20, %s284_s21  }
   0x9   :  { %s43_s26 = sshll.u32 %s286_s0, 4  ;;  %s44_s26 = int_to_ptr.vmem [resolvable:$true] %s43_s26 }
   0xa   :  { %49 = dma.hbm_to_vmem [thread:$0]  %s42_s1, 256, %s44_s26, [#allocation6], %s283_s20, %s283_s20, %s284_s21  }
   0xb   :  { %276 = dma.done.wait [#allocation3], 512  }
   0xc   :  { %277 = vsyncadd [#allocation3], 4294966784 }
   0xd   :  { %278 = dma.done.wait [#allocation6], 1280  }
   0xe   :  { %279 = vsyncadd [#allocation6], 4294966016  ;;  %v73_v0 = vld [vmem:[#allocation5 + $0x38] sm:$0xff]  ;;  %v72_v1 = vld [vmem:[#allocation5 + $0x30] sm:$0xff]  ;;  %vm74_vm0 = vcmask 523264   ;;  %s287_s2 = smov [#allocation8]  }
   0xf   :  { %151 = vmatpush.msra.mxu2 %v73_v0  ;;  %152 = vmatpush.msra.mxu3 %v73_v0  ;;  %v71_v2 = vld [vmem:[#allocation5 + $0x28] sm:$0xff]  ;;  %v70_v3 = vld [vmem:[#allocation5 + $0x20] sm:$0xff]  ;;  %v69_v4 = vld [vmem:[#allocation5 + $0x18] sm:$0xff]  ;;  %s130_s27 = sshll.u32 %s287_s2, 4  ;;  %s132_s30 = sshll.u32 %s335_s3, 4  ;;  %s131_s27 = int_to_ptr.vmem [resolvable:$true] %s130_s27  ;;  %s133_s30 = int_to_ptr.hbm [resolvable:$true] %s132_s30 }
  0x10   :  { %95 = vmatpush.msra.mxu0 %v73_v0  ;;  %150 = vmatpush.msra.mxu1 %v73_v0  ;;  %v68_v5 = vld [vmem:[#allocation5 + $0x10] sm:$0xff]  ;;  %v67_v6 = vld [vmem:[#allocation5 + $0x8] sm:$0xff]  ;;  %v66_v7 = vld [vmem:[#allocation5] sm:$0xff] }
  0x11   :  { %154 = vmatpush.msra.mxu2 %v72_v1  ;;  %155 = vmatpush.msra.mxu3 %v72_v1  ;;  %v64_v8 = vld [vmem:[#allocation2 + $0x10] sm:$0xff]  ;;  %v65_v9 = vld [vmem:[#allocation2 + $0x18] sm:$0xff]  ;;  %v62_v10 = vld [vmem:[#allocation2] sm:$0xff] }
  0x12   :  { %96 = vmatpush.msra.mxu0 %v72_v1  ;;  %153 = vmatpush.msra.mxu1 %v72_v1  ;;  %v63_v11 = vld [vmem:[#allocation2 + $0x8] sm:$0xff]  ;;  %v116_v12 = vld [vmem:[#allocation7] sm:$0xff] }
  0x13   :  { %157 = vmatpush.msra.mxu2 %v71_v2  ;;  %158 = vmatpush.msra.mxu3 %v71_v2  ;;  %v117_v13 = vld [vmem:[#allocation7 + $0x8] sm:$0xff] }
  0x14   :  { %97 = vmatpush.msra.mxu0 %v71_v2  ;;  %156 = vmatpush.msra.mxu1 %v71_v2 }
  0x15   :  { %160 = vmatpush.msra.mxu2 %v70_v3  ;;  %161 = vmatpush.msra.mxu3 %v70_v3 }
  0x16   :  { %98 = vmatpush.msra.mxu0 %v70_v3  ;;  %159 = vmatpush.msra.mxu1 %v70_v3 }
  0x17   :  { %163 = vmatpush.msra.mxu2 %v69_v4  ;;  %164 = vmatpush.msra.mxu3 %v69_v4 }
  0x18   :  { %99 = vmatpush.msra.mxu0 %v69_v4  ;;  %162 = vmatpush.msra.mxu1 %v69_v4 }
  0x19   :  { %166 = vmatpush.msra.mxu2 %v68_v5  ;;  %167 = vmatpush.msra.mxu3 %v68_v5 }
  0x1a   :  { %100 = vmatpush.msra.mxu0 %v68_v5  ;;  %165 = vmatpush.msra.mxu1 %v68_v5 }
  0x1b   :  { %169 = vmatpush.msra.mxu2 %v67_v6  ;;  %170 = vmatpush.msra.mxu3 %v67_v6 }
  0x1c   :  { %101 = vmatpush.msra.mxu0 %v67_v6  ;;  %168 = vmatpush.msra.mxu1 %v67_v6 }
  0x1d   :  { %172 = vmatpush.msra.mxu2 %v66_v7  ;;  %173 = vmatpush.msra.mxu3 %v66_v7 }
  0x1e   :  { %148 = vmatmul.msk.f32.vlgmr.msra.gmra.mxu2 %vm74_vm0, %v64_v8  ;;  %149 = vmatmul.msk.f32.vlgmr.msra.gmra.mxu3 %vm74_vm0, %v65_v9 }
  0x1f   :  { %102 = vmatpush.msra.mxu0 %v66_v7  ;;  %171 = vmatpush.msra.mxu1 %v66_v7 }
  0x20   :  { %146 = vmatmul.msk.f32.vlgmr.msra.gmra.mxu0 %vm74_vm0, %v62_v10  ;;  %147 = vmatmul.msk.f32.vlgmr.msra.gmra.mxu1 %vm74_vm0, %v63_v11 }
  0x9d   :  { %v104_v14 = vpop.f32.mrf.mxu0  ;;  %v107_v15 = vpop.f32.mrf.mxu1 }
  0x9e   :  { %v118_v16 = vadd.f32 %v116_v12, %v104_v14  ;;  %v119_v17 = vadd.f32 %v117_v13, %v107_v15 }
  0xa0   :  { %122 = vst [vmem:[#allocation8] sm:$0xff] %v118_v16 }
  0xa1   :  { %123 = vst [vmem:[#allocation8 + $0x8] sm:$0xff] %v119_v17  ;;  %v110_v18 = vpop.f32.mrf.mxu2  ;;  %v113_v19 = vpop.f32.mrf.mxu3 }
  0xa2   :  { %v120_v20 = vadd.f32 %v116_v12, %v110_v18  ;;  %v121_v21 = vadd.f32 %v117_v13, %v113_v19 }
  0xa4   :  { %124 = vst [vmem:[#allocation8 + $0x10] sm:$0xff] %v120_v20 }
  0xa5   :  { %125 = vst [vmem:[#allocation8 + $0x18] sm:$0xff] %v121_v21 }
  0xa6   :  { %138 = dma.vmem_to_hbm [thread:$0]  %s131_s27, 512, %s133_s30, [#allocation4], %s283_s20, %s283_s20, %s284_s21  }
  0xa7   :  { %280 = dma.done.wait [#allocation4], 512  }
  0xa8   :  { %281 = vsyncadd [#allocation4], 4294966784 }
  0xa9   :  { %143 = vsyncpa [#allocation3], 1 }
  0xaa   :  { %144 = vsyncpa [#allocation6], 1 }
  0xab   :  { %145 = vsyncpa [#allocation4], 1 }

</bundles_post_ra>
